<compile_context>
chip_gen: v7x
topology: tpu7x:2x2x1
jax: 0.10.0
libtpu: 0.0.40
codegen_flags: <defaults>
</compile_context>

<pallas_src>
import functools

import jax
import jax.numpy as jnp
from jax.experimental import pallas as pl
from jax.experimental.pallas import tpu as pltpu


def _round_up(v, m):
    return ((v + m - 1) // m) * m


def _pad_to(a, shape):
    pads = [(0, t - s) for s, t in zip(a.shape, shape)]
    if all(p == (0, 0) for p in pads):
        return a
    return jnp.pad(a, pads)


def _pick_tile(total, cap, step=128):
    """Largest multiple of `step` that divides `total` and is <= cap."""
    cap = min(cap, total)
    cap = max(step, (cap // step) * step)
    for cand in range(cap, step - 1, -step):
        if total % cand == 0:
            return cand
    return step


def _vmem_limit_bytes():
    try:
        cap = pltpu.get_tpu_info().vmem_capacity_bytes
    except Exception:
        cap = 64 * 1024 * 1024
    return int(min(100 * 1024 * 1024, 0.75 * cap))


def _layer_norm_f32(out, gamma, beta, d_model, eps):
    # `out` padded lanes are exactly zero, so unmasked sums over the padded
    # width equal sums over the real d_model -> single-pass mean / E[x^2].
    inv_d = 1.0 / d_model
    s1 = jnp.sum(out, axis=-1, keepdims=True)
    s2 = jnp.sum(out * out, axis=-1, keepdims=True)
    mean = s1 * inv_d
    var = jnp.maximum(s2 * inv_d - mean * mean, 0.0)
    normed = (out - mean) * jax.lax.rsqrt(var + eps)
    return normed * gamma.astype(jnp.float32) + beta.astype(jnp.float32)


# -----------------------------------------------------------------------------
# Path A: weights resident in VMEM (single-buffered), 1-D grid over row tiles.
# -----------------------------------------------------------------------------
def ffn_resident_kernel(x_ref, w1_ref, b1_ref, w2_ref, b2_ref, gamma_ref,
                        beta_ref, o_ref, *, d_model, hidden_tile, num_h_tiles,
                        eps=1e-5):
    x = x_ref[...]                                      # native dtype -> MXU
    # Fused epilogue init: residual + fc2 bias (saves one (tm, Dp) f32 pass).
    acc0 = x.astype(jnp.float32) + b2_ref[...].astype(jnp.float32)

    if num_h_tiles == 1:
        h = jnp.dot(x, w1_ref[...], preferred_element_type=jnp.float32)
        h = jnp.maximum(h + b1_ref[...].astype(jnp.float32), 0.0)
        acc = acc0 + jnp.dot(h.astype(w2_ref.dtype), w2_ref[...],
                             preferred_element_type=jnp.float32)
    else:
        def h_step(k, acc):
            start = pl.multiple_of(k * hidden_tile, hidden_tile)
            w1_c = w1_ref[:, pl.ds(start, hidden_tile)]         # (Dp, TH)
            b1_c = b1_ref[:, pl.ds(start, hidden_tile)].astype(jnp.float32)
            h = jnp.dot(x, w1_c, preferred_element_type=jnp.float32) + b1_c
            h = jnp.maximum(h, 0.0)
            w2_c = w2_ref[pl.ds(start, hidden_tile), :]          # (TH, Dp)
            return acc + jnp.dot(h.astype(w2_c.dtype), w2_c,
                                 preferred_element_type=jnp.float32)

        acc = jax.lax.fori_loop(0, num_h_tiles, h_step, acc0,
                                unroll=(num_h_tiles <= 8))

    o_ref[...] = _layer_norm_f32(acc, gamma_ref[...], beta_ref[...],
                                 d_model, eps).astype(o_ref.dtype)


# -----------------------------------------------------------------------------
# Path B: H streamed as an "arbitrary" grid axis (weights never fully resident).
# -----------------------------------------------------------------------------
def ffn_htiled_kernel(x_ref, w1_ref, b1_ref, w2_ref, b2_ref, gamma_ref,
                      beta_ref, o_ref, acc_ref, *, d_model, eps=1e-5):
    k = pl.program_id(1)

    @pl.when(k == 0)
    def _():
        acc_ref[...] = (x_ref[...].astype(jnp.float32)
                        + b2_ref[...].astype(jnp.float32))

    x = x_ref[...]
    h = jnp.dot(x, w1_ref[...], preferred_element_type=jnp.float32)
    h = jnp.maximum(h + b1_ref[...].astype(jnp.float32), 0.0)
    acc_ref[...] += jnp.dot(h.astype(w2_ref.dtype), w2_ref[...],
                            preferred_element_type=jnp.float32)

    @pl.when(k == pl.num_programs(1) - 1)
    def _():
        o_ref[...] = _layer_norm_f32(acc_ref[...], gamma_ref[...],
                                     beta_ref[...], d_model,
                                     eps).astype(o_ref.dtype)


# -----------------------------------------------------------------------------
# Wrapper
# -----------------------------------------------------------------------------
def pad_ffn_params(w1, b1, w2, b2, gamma, beta):
    """Pad weights to lane-dense (multiple-of-128) shapes ONCE at model setup."""
    D, H = w1.shape
    Dp, Hp = _round_up(D, 128), _round_up(H, 128)
    return dict(
        w1=_pad_to(w1, (Dp, Hp)), b1=_pad_to(b1, (1, Hp)),
        w2=_pad_to(w2, (Hp, Dp)), b2=_pad_to(b2, (1, Dp)),
        gamma=_pad_to(gamma, (1, Dp)), beta=_pad_to(beta, (1, Dp)),
        d_model=D, hidden=H)


def position_wise_feed_forward(x, params, *, row_tile=512, hidden_tile=None,
                               force_h_grid=False, eps=1e-5):
    """x: (B, S, D). params: output of pad_ffn_params. Returns (B, S, D)."""
    B, S, D = x.shape
    H = params["hidden"]
    assert D == params["d_model"]
    w1p, b1p = params["w1"], params["b1"]
    w2p, b2p = params["w2"], params["b2"]
    gammap, betap = params["gamma"], params["beta"]
    Dp, Hp = w1p.shape
    R = B * S

    xsize = x.dtype.itemsize
    wsize = w1p.dtype.itemsize
    vmem_limit = _vmem_limit_bytes()

    resident_weight_bytes = ((w1p.size + w2p.size) * wsize
                             + (b1p.size + b2p.size + gammap.size + betap.size)
                             * gammap.dtype.itemsize)
    use_resident = (not force_h_grid) and resident_weight_bytes <= 40 * 1024 * 1024

    # Hidden-dim tile: largest 128-multiple divisor of Hp, capped.
    if (hidden_tile is not None and hidden_tile % 128 == 0
            and Hp % hidden_tile == 0):
        th = hidden_tile
    elif use_resident:
        th = _pick_tile(Hp, 2048)
    else:
        th_cap = max(128, (16 * 1024 * 1024) // max(1, 4 * Dp * wsize))
        th = _pick_tile(Hp, min(2048, th_cap))
    n_h = Hp // th

    # Row tile: ragged-friendly (round_up(R, 8) for small R), shrink if the
    # estimated VMEM footprint would overflow the limit.
    tm = max(8, min(row_tile, _round_up(R, 8)))
    weight_bytes = resident_weight_bytes if use_resident else 4 * Dp * th * wsize

    def _est(tm_):
        return (weight_bytes
                + 4 * tm_ * Dp * xsize     # x + out tiles, double-buffered
                + tm_ * Dp * 4             # f32 accumulator
                + tm_ * th * 4)            # f32 hidden intermediate

    while _est(tm) > int(0.85 * vmem_limit) and tm > 64:
        tm = max(64, _round_up(tm // 2, 8))

    Rp = _round_up(R, tm)
    n_rows = Rp // tm
    x2d = _pad_to(x.reshape(R, D), (Rp, Dp))

    cost = pl.CostEstimate(
        flops=4 * R * D * H + 10 * R * D,
        transcendentals=R,
        bytes_accessed=int((x2d.size + w1p.size + w2p.size + b1p.size
                            + b2p.size + gammap.size + betap.size) * xsize
                           + Rp * Dp * xsize))

    def _run(single_buffer):
        def const_spec(shape, ngrid):
            idx = (lambda i: (0, 0)) if ngrid == 1 else (lambda i, k: (0, 0))
            if single_buffer:
                # Grid-invariant block: no point double-buffering it.
                return pl.BlockSpec(shape, idx, pipeline_mode=pl.Buffered(1))
            return pl.BlockSpec(shape, idx)

        if use_resident:
            kernel = functools.partial(ffn_resident_kernel, d_model=D,
                                       hidden_tile=th, num_h_tiles=n_h, eps=eps)
            in_specs = [
                pl.BlockSpec((tm, Dp), lambda i: (i, 0)),   # x tile (pipelined)
                const_spec((Dp, Hp), 1),                    # w1 (VMEM resident)
                const_spec((1, Hp), 1),                     # b1
                const_spec((Hp, Dp), 1),                    # w2 (VMEM resident)
                const_spec((1, Dp), 1),                     # b2
                const_spec((1, Dp), 1),                     # gamma
                const_spec((1, Dp), 1),                     # beta
            ]
            out_specs = pl.BlockSpec((tm, Dp), lambda i: (i, 0))
            grid = (n_rows,)
            scratch_shapes = ()
            dims = ("parallel",)
        else:
            kernel = functools.partial(ffn_htiled_kernel, d_model=D, eps=eps)
            in_specs = [
                pl.BlockSpec((tm, Dp), lambda i, k: (i, 0)),  # x (resident over k)
                pl.BlockSpec((Dp, th), lambda i, k: (0, k)),  # w1 chunk (streamed)
                pl.BlockSpec((1, th), lambda i, k: (0, k)),   # b1 chunk
                pl.BlockSpec((th, Dp), lambda i, k: (k, 0)),  # w2 chunk (streamed)
                const_spec((1, Dp), 2),                       # b2
                const_spec((1, Dp), 2),                       # gamma
                const_spec((1, Dp), 2),                       # beta
            ]
            out_specs = pl.BlockSpec((tm, Dp), lambda i, k: (i, 0))
            grid = (n_rows, n_h)
            scratch_shapes = [pltpu.VMEM((tm, Dp), jnp.float32)]
            dims = ("parallel", "arbitrary")

        return pl.pallas_call(
            kernel,
            out_shape=jax.ShapeDtypeStruct((Rp, Dp), x.dtype),
            grid=grid,
            in_specs=in_specs,
            out_specs=out_specs,
            scratch_shapes=scratch_shapes,
            compiler_params=pltpu.CompilerParams(
                dimension_semantics=dims,
                vmem_limit_bytes=vmem_limit),
            cost_estimate=cost,
        )(x2d, w1p, b1p, w2p, b2p, gammap, betap)

    try:
        out2d = _run(True)
    except Exception:
        # Fallback for JAX versions without single-buffer pipeline_mode support.
        out2d = _run(False)

    return out2d[:R, :D].reshape(B, S, D)


def reference(x, w1, b1, w2, b2, gamma, beta):
    h = jnp.maximum(x @ w1 + b1[0], 0.0)
    out = h @ w2 + b2[0]
    out = out + x
    mean = jnp.mean(out, axis=-1, keepdims=True)
    var = jnp.mean((out - mean) ** 2, axis=-1, keepdims=True)
    normed = (out - mean) / jnp.sqrt(var + 1e-5)
    return normed * gamma[0] + beta[0]


if __name__ == "__main__":
    def make_params(key, dim_model, hidden):
        k1, kb1, k2, kb2 = jax.random.split(key, 4)
        w1 = jax.random.normal(k1, (dim_model, hidden), jnp.float32) / jnp.sqrt(dim_model)
        b1 = jax.random.normal(kb1, (1, hidden), jnp.float32) * 0.01
        w2 = jax.random.normal(k2, (hidden, dim_model), jnp.float32) / jnp.sqrt(hidden)
        b2 = jax.random.normal(kb2, (1, dim_model), jnp.float32) * 0.01
        gamma = jnp.ones((1, dim_model), jnp.float32)     # nn.LayerNorm weight init
        beta = jnp.zeros((1, dim_model), jnp.float32)     # nn.LayerNorm bias init
        return w1, b1, w2, b2, gamma, beta

    key = jax.random.PRNGKey(0)
    kx1, kp1, kx2, kp2 = jax.random.split(key, 4)

    # 1) Small default test (resident-weight path, single-shot H).
    B, S, dim_model, hidden = 2, 8, 32, 64
    x = jax.random.normal(kx1, (B, S, dim_model), dtype=jnp.float32)
    raw = make_params(kp1, dim_model, hidden)
    params = pad_ffn_params(*raw)              # pad weights once at setup
    out = jax.block_until_ready(position_wise_feed_forward(x, params))
    ref = reference(x, *raw)
    assert out.shape == (B, S, dim_model)
    assert jnp.allclose(out, ref, atol=1e-4, rtol=1e-5), "mismatch (resident path)"

    # 2) Exercise the chunked resident path (unrolled fori_loop over H chunks).
    B2, S2, D2, H2 = 2, 24, 128, 512
    x2 = jax.random.normal(kx2, (B2, S2, D2), dtype=jnp.float32)
    raw2 = make_params(kp2, D2, H2)
    params2 = pad_ffn_params(*raw2)
    out2 = jax.block_until_ready(
        position_wise_feed_forward(x2, params2, hidden_tile=128))
    ref2 = reference(x2, *raw2)
    assert jnp.allclose(out2, ref2, atol=1e-4, rtol=1e-5), "mismatch (chunked path)"

    # 3) Exercise the H-grid streaming fallback (used when weights don't fit VMEM).
    out3 = jax.block_until_ready(
        position_wise_feed_forward(x2, params2, force_h_grid=True,
                                   hidden_tile=128))
    assert jnp.allclose(out3, ref2, atol=1e-4, rtol=1e-5), "mismatch (H-grid path)"

    print("KERNEL_OK")
</pallas_src>

<mosaic_0001>
module attributes {stable_mosaic.version = 11 : i64} {
  func.func @ffn_resident_kernel(%arg0: i32, %arg1: memref<16x128xf32, #tpu.memory_space<vmem>>, %arg2: memref<128x128xf32, #tpu.memory_space<vmem>>, %arg3: memref<1x128xf32, #tpu.memory_space<vmem>>, %arg4: memref<128x128xf32, #tpu.memory_space<vmem>>, %arg5: memref<1x128xf32, #tpu.memory_space<vmem>>, %arg6: memref<1x128xf32, #tpu.memory_space<vmem>>, %arg7: memref<1x128xf32, #tpu.memory_space<vmem>>, %arg8: memref<16x128xf32, #tpu.memory_space<vmem>>) attributes {dimension_semantics = [#tpu.dimension_semantics<parallel>], iteration_bounds = array<i64: 1>, scalar_prefetch = 0 : i64, scratch_operands = 0 : i64, tpu.core_type = #tpu.core_type<tc>, window_params = [{transform_indices = @transform_0, window_bounds = array<i64: 16, 128>}, {pipeline_mode = #tpu.pipeline_mode<synchronous>, transform_indices = @transform_1, window_bounds = array<i64: 128, 128>}, {pipeline_mode = #tpu.pipeline_mode<synchronous>, transform_indices = @transform_2, window_bounds = array<i64: 1, 128>}, {pipeline_mode = #tpu.pipeline_mode<synchronous>, transform_indices = @transform_3, window_bounds = array<i64: 128, 128>}, {pipeline_mode = #tpu.pipeline_mode<synchronous>, transform_indices = @transform_4, window_bounds = array<i64: 1, 128>}, {pipeline_mode = #tpu.pipeline_mode<synchronous>, transform_indices = @transform_5, window_bounds = array<i64: 1, 128>}, {pipeline_mode = #tpu.pipeline_mode<synchronous>, transform_indices = @transform_6, window_bounds = array<i64: 1, 128>}, {transform_indices = @transform_7, window_bounds = array<i64: 16, 128>}]} {
    %c0 = arith.constant 0 : index
    %c0_0 = arith.constant 0 : index
    %0 = vector.load %arg1[%c0, %c0_0] : memref<16x128xf32, #tpu.memory_space<vmem>>, vector<16x128xf32>
    %c0_1 = arith.constant 0 : index
    %c0_2 = arith.constant 0 : index
    %1 = vector.load %arg5[%c0_1, %c0_2] : memref<1x128xf32, #tpu.memory_space<vmem>>, vector<1x128xf32>
    %2 = vector.broadcast %1 : vector<1x128xf32> to vector<16x128xf32>
    %3 = arith.addf %0, %2 : vector<16x128xf32>
    %c0_3 = arith.constant 0 : index
    %c0_4 = arith.constant 0 : index
    %4 = vector.load %arg2[%c0_3, %c0_4] : memref<128x128xf32, #tpu.memory_space<vmem>>, vector<128x128xf32>
    %cst = arith.constant dense<0.000000e+00> : vector<16x128xf32>
    %5 = tpu.matmul %0, %4, %cst {dimension_numbers = #tpu.dot_dimension_numbers<[1], [0], [0], [1], [0, 0, 1, 1], [], []>} : vector<16x128xf32>, vector<128x128xf32>, vector<16x128xf32> -> vector<16x128xf32>
    %c0_5 = arith.constant 0 : index
    %c0_6 = arith.constant 0 : index
    %6 = vector.load %arg3[%c0_5, %c0_6] : memref<1x128xf32, #tpu.memory_space<vmem>>, vector<1x128xf32>
    %7 = vector.broadcast %6 : vector<1x128xf32> to vector<16x128xf32>
    %8 = arith.addf %5, %7 : vector<16x128xf32>
    %cst_7 = arith.constant 0.000000e+00 : f32
    %9 = vector.broadcast %cst_7 : f32 to vector<16x128xf32>
    %10 = arith.maximumf %8, %9 : vector<16x128xf32>
    %c0_8 = arith.constant 0 : index
    %c0_9 = arith.constant 0 : index
    %11 = vector.load %arg4[%c0_8, %c0_9] : memref<128x128xf32, #tpu.memory_space<vmem>>, vector<128x128xf32>
    %cst_10 = arith.constant dense<0.000000e+00> : vector<16x128xf32>
    %12 = tpu.matmul %10, %11, %cst_10 {dimension_numbers = #tpu.dot_dimension_numbers<[1], [0], [0], [1], [0, 0, 1, 1], [], []>} : vector<16x128xf32>, vector<128x128xf32>, vector<16x128xf32> -> vector<16x128xf32>
    %13 = arith.addf %3, %12 : vector<16x128xf32>
    %c0_11 = arith.constant 0 : index
    %c0_12 = arith.constant 0 : index
    %14 = vector.load %arg6[%c0_11, %c0_12] : memref<1x128xf32, #tpu.memory_space<vmem>>, vector<1x128xf32>
    %c0_13 = arith.constant 0 : index
    %c0_14 = arith.constant 0 : index
    %15 = vector.load %arg7[%c0_13, %c0_14] : memref<1x128xf32, #tpu.memory_space<vmem>>, vector<1x128xf32>
    %cst_15 = arith.constant dense<0.000000e+00> : vector<16xf32>
    %16 = vector.multi_reduction <add>, %13, %cst_15 [1] : vector<16x128xf32> to vector<16xf32>
    %17 = vector.shape_cast %16 : vector<16xf32> to vector<16x1xf32>
    %18 = arith.mulf %13, %13 : vector<16x128xf32>
    %cst_16 = arith.constant dense<0.000000e+00> : vector<16xf32>
    %19 = vector.multi_reduction <add>, %18, %cst_16 [1] : vector<16x128xf32> to vector<16xf32>
    %20 = vector.shape_cast %19 : vector<16xf32> to vector<16x1xf32>
    %cst_17 = arith.constant 3.125000e-02 : f32
    %21 = vector.broadcast %cst_17 : f32 to vector<16x1xf32>
    %22 = arith.mulf %17, %21 : vector<16x1xf32>
    %cst_18 = arith.constant 3.125000e-02 : f32
    %23 = vector.broadcast %cst_18 : f32 to vector<16x1xf32>
    %24 = arith.mulf %20, %23 : vector<16x1xf32>
    %25 = arith.mulf %22, %22 : vector<16x1xf32>
    %26 = arith.subf %24, %25 : vector<16x1xf32>
    %cst_19 = arith.constant 0.000000e+00 : f32
    %27 = vector.broadcast %cst_19 : f32 to vector<16x1xf32>
    %28 = arith.maximumf %26, %27 : vector<16x1xf32>
    %29 = vector.broadcast %22 : vector<16x1xf32> to vector<16x128xf32>
    %30 = arith.subf %13, %29 : vector<16x128xf32>
    %cst_20 = arith.constant 9.99999974E-6 : f32
    %31 = vector.broadcast %cst_20 : f32 to vector<16x1xf32>
    %32 = arith.addf %28, %31 : vector<16x1xf32>
    %33 = math.rsqrt %32 : vector<16x1xf32>
    %34 = vector.broadcast %33 : vector<16x1xf32> to vector<16x128xf32>
    %35 = arith.mulf %30, %34 : vector<16x128xf32>
    %36 = vector.broadcast %14 : vector<1x128xf32> to vector<16x128xf32>
    %37 = arith.mulf %35, %36 : vector<16x128xf32>
    %38 = vector.broadcast %15 : vector<1x128xf32> to vector<16x128xf32>
    %39 = arith.addf %37, %38 : vector<16x128xf32>
    %c0_21 = arith.constant 0 : index
    %c0_22 = arith.constant 0 : index
    %40 = vector.load %arg8[%c0_21, %c0_22] : memref<16x128xf32, #tpu.memory_space<vmem>>, vector<16x128xf32>
    tpu.vector_store %arg8[%c0_21, %c0_22], %39 {strides = array<i32>} : memref<16x128xf32, #tpu.memory_space<vmem>>, vector<16x128xf32>,
    return
  }
  func.func @transform_0(%arg0: i32) -> (i32, i32) {
    %c0_i32 = arith.constant 0 : i32
    %c0_i32_0 = arith.constant 0 : i32
    return %arg0, %c0_i32 : i32, i32
  }
  func.func @transform_1(%arg0: i32) -> (i32, i32) {
    %c0_i32 = arith.constant 0 : i32
    %c0_i32_0 = arith.constant 0 : i32
    %c0_i32_1 = arith.constant 0 : i32
    return %c0_i32, %c0_i32_0 : i32, i32
  }
  func.func @transform_2(%arg0: i32) -> (i32, i32) {
    %c0_i32 = arith.constant 0 : i32
    %c0_i32_0 = arith.constant 0 : i32
    %c0_i32_1 = arith.constant 0 : i32
    return %c0_i32, %c0_i32_0 : i32, i32
  }
  func.func @transform_3(%arg0: i32) -> (i32, i32) {
    %c0_i32 = arith.constant 0 : i32
    %c0_i32_0 = arith.constant 0 : i32
    %c0_i32_1 = arith.constant 0 : i32
    return %c0_i32, %c0_i32_0 : i32, i32
  }
  func.func @transform_4(%arg0: i32) -> (i32, i32) {
    %c0_i32 = arith.constant 0 : i32
    %c0_i32_0 = arith.constant 0 : i32
    %c0_i32_1 = arith.constant 0 : i32
    return %c0_i32, %c0_i32_0 : i32, i32
  }
  func.func @transform_5(%arg0: i32) -> (i32, i32) {
    %c0_i32 = arith.constant 0 : i32
    %c0_i32_0 = arith.constant 0 : i32
    %c0_i32_1 = arith.constant 0 : i32
    return %c0_i32, %c0_i32_0 : i32, i32
  }
  func.func @transform_6(%arg0: i32) -> (i32, i32) {
    %c0_i32 = arith.constant 0 : i32
    %c0_i32_0 = arith.constant 0 : i32
    %c0_i32_1 = arith.constant 0 : i32
    return %c0_i32, %c0_i32_0 : i32, i32
  }
  func.func @transform_7(%arg0: i32) -> (i32, i32) {
    %c0_i32 = arith.constant 0 : i32
    %c0_i32_0 = arith.constant 0 : i32
    return %arg0, %c0_i32 : i32, i32
  }
}

module attributes {stable_mosaic.version = 11 : i64} {
  func.func @ffn_resident_kernel(%arg0: i32, %arg1: memref<16x128xf32, #tpu.memory_space<vmem>>, %arg2: memref<128x128xf32, #tpu.memory_space<vmem>>, %arg3: memref<1x128xf32, #tpu.memory_space<vmem>>, %arg4: memref<128x128xf32, #tpu.memory_space<vmem>>, %arg5: memref<1x128xf32, #tpu.memory_space<vmem>>, %arg6: memref<1x128xf32, #tpu.memory_space<vmem>>, %arg7: memref<1x128xf32, #tpu.memory_space<vmem>>, %arg8: memref<16x128xf32, #tpu.memory_space<vmem>>) attributes {dimension_semantics = [#tpu.dimension_semantics<parallel>], iteration_bounds = array<i64: 1>, scalar_prefetch = 0 : i64, scratch_operands = 0 : i64, tpu.core_type = #tpu.core_type<tc>, window_params = [{transform_indices = @transform_0, window_bounds = array<i64: 16, 128>}, {pipeline_mode = #tpu.pipeline_mode<synchronous>, transform_indices = @transform_1, window_bounds = array<i64: 128, 128>}, {pipeline_mode = #tpu.pipeline_mode<synchronous>, transform_indices = @transform_2, window_bounds = array<i64: 1, 128>}, {pipeline_mode = #tpu.pipeline_mode<synchronous>, transform_indices = @transform_3, window_bounds = array<i64: 128, 128>}, {pipeline_mode = #tpu.pipeline_mode<synchronous>, transform_indices = @transform_4, window_bounds = array<i64: 1, 128>}, {pipeline_mode = #tpu.pipeline_mode<synchronous>, transform_indices = @transform_5, window_bounds = array<i64: 1, 128>}, {pipeline_mode = #tpu.pipeline_mode<synchronous>, transform_indices = @transform_6, window_bounds = array<i64: 1, 128>}, {transform_indices = @transform_7, window_bounds = array<i64: 16, 128>}]} {
    %c0 = arith.constant 0 : index
    %c0_0 = arith.constant 0 : index
    %0 = vector.load %arg1[%c0, %c0_0] : memref<16x128xf32, #tpu.memory_space<vmem>>, vector<16x128xf32>
    %c0_1 = arith.constant 0 : index
    %c0_2 = arith.constant 0 : index
    %1 = vector.load %arg5[%c0_1, %c0_2] : memref<1x128xf32, #tpu.memory_space<vmem>>, vector<1x128xf32>
    %2 = vector.broadcast %1 : vector<1x128xf32> to vector<16x128xf32>
    %3 = arith.addf %0, %2 : vector<16x128xf32>
    %c0_3 = arith.constant 0 : index
    %c0_4 = arith.constant 0 : index
    %4 = vector.load %arg2[%c0_3, %c0_4] : memref<128x128xf32, #tpu.memory_space<vmem>>, vector<128x128xf32>
    %cst = arith.constant dense<0.000000e+00> : vector<16x128xf32>
    %5 = tpu.matmul %0, %4, %cst {dimension_numbers = #tpu.dot_dimension_numbers<[1], [0], [0], [1], [0, 0, 1, 1], [], []>} : vector<16x128xf32>, vector<128x128xf32>, vector<16x128xf32> -> vector<16x128xf32>
    %c0_5 = arith.constant 0 : index
    %c0_6 = arith.constant 0 : index
    %6 = vector.load %arg3[%c0_5, %c0_6] : memref<1x128xf32, #tpu.memory_space<vmem>>, vector<1x128xf32>
    %7 = vector.broadcast %6 : vector<1x128xf32> to vector<16x128xf32>
    %8 = arith.addf %5, %7 : vector<16x128xf32>
    %cst_7 = arith.constant 0.000000e+00 : f32
    %9 = vector.broadcast %cst_7 : f32 to vector<16x128xf32>
    %10 = arith.maximumf %8, %9 : vector<16x128xf32>
    %c0_8 = arith.constant 0 : index
    %c0_9 = arith.constant 0 : index
    %11 = vector.load %arg4[%c0_8, %c0_9] : memref<128x128xf32, #tpu.memory_space<vmem>>, vector<128x128xf32>
    %cst_10 = arith.constant dense<0.000000e+00> : vector<16x128xf32>
    %12 = tpu.matmul %10, %11, %cst_10 {dimension_numbers = #tpu.dot_dimension_numbers<[1], [0], [0], [1], [0, 0, 1, 1], [], []>} : vector<16x128xf32>, vector<128x128xf32>, vector<16x128xf32> -> vector<16x128xf32>
    %13 = arith.addf %3, %12 : vector<16x128xf32>
    %c0_11 = arith.constant 0 : index
    %c0_12 = arith.constant 0 : index
    %14 = vector.load %arg6[%c0_11, %c0_12] : memref<1x128xf32, #tpu.memory_space<vmem>>, vector<1x128xf32>
    %c0_13 = arith.constant 0 : index
    %c0_14 = arith.constant 0 : index
    %15 = vector.load %arg7[%c0_13, %c0_14] : memref<1x128xf32, #tpu.memory_space<vmem>>, vector<1x128xf32>
    %cst_15 = arith.constant dense<0.000000e+00> : vector<16xf32>
    %16 = vector.multi_reduction <add>, %13, %cst_15 [1] : vector<16x128xf32> to vector<16xf32>
    %17 = vector.shape_cast %16 : vector<16xf32> to vector<16x1xf32>
    %18 = arith.mulf %13, %13 : vector<16x128xf32>
    %cst_16 = arith.constant dense<0.000000e+00> : vector<16xf32>
    %19 = vector.multi_reduction <add>, %18, %cst_16 [1] : vector<16x128xf32> to vector<16xf32>
    %20 = vector.shape_cast %19 : vector<16xf32> to vector<16x1xf32>
    %cst_17 = arith.constant 3.125000e-02 : f32
    %21 = vector.broadcast %cst_17 : f32 to vector<16x1xf32>
    %22 = arith.mulf %17, %21 : vector<16x1xf32>
    %cst_18 = arith.constant 3.125000e-02 : f32
    %23 = vector.broadcast %cst_18 : f32 to vector<16x1xf32>
    %24 = arith.mulf %20, %23 : vector<16x1xf32>
    %25 = arith.mulf %22, %22 : vector<16x1xf32>
    %26 = arith.subf %24, %25 : vector<16x1xf32>
    %cst_19 = arith.constant 0.000000e+00 : f32
    %27 = vector.broadcast %cst_19 : f32 to vector<16x1xf32>
    %28 = arith.maximumf %26, %27 : vector<16x1xf32>
    %29 = vector.broadcast %22 : vector<16x1xf32> to vector<16x128xf32>
    %30 = arith.subf %13, %29 : vector<16x128xf32>
    %cst_20 = arith.constant 9.99999974E-6 : f32
    %31 = vector.broadcast %cst_20 : f32 to vector<16x1xf32>
    %32 = arith.addf %28, %31 : vector<16x1xf32>
    %33 = math.rsqrt %32 : vector<16x1xf32>
    %34 = vector.broadcast %33 : vector<16x1xf32> to vector<16x128xf32>
    %35 = arith.mulf %30, %34 : vector<16x128xf32>
    %36 = vector.broadcast %14 : vector<1x128xf32> to vector<16x128xf32>
    %37 = arith.mulf %35, %36 : vector<16x128xf32>
    %38 = vector.broadcast %15 : vector<1x128xf32> to vector<16x128xf32>
    %39 = arith.addf %37, %38 : vector<16x128xf32>
    %c0_21 = arith.constant 0 : index
    %c0_22 = arith.constant 0 : index
    %40 = vector.load %arg8[%c0_21, %c0_22] : memref<16x128xf32, #tpu.memory_space<vmem>>, vector<16x128xf32>
    tpu.vector_store %arg8[%c0_21, %c0_22], %39 {strides = array<i32>} : memref<16x128xf32, #tpu.memory_space<vmem>>, vector<16x128xf32>,
    return
  }
  func.func @transform_0(%arg0: i32) -> (i32, i32) {
    %c0_i32 = arith.constant 0 : i32
    %c0_i32_0 = arith.constant 0 : i32
    return %arg0, %c0_i32 : i32, i32
  }
  func.func @transform_1(%arg0: i32) -> (i32, i32) {
    %c0_i32 = arith.constant 0 : i32
    %c0_i32_0 = arith.constant 0 : i32
    %c0_i32_1 = arith.constant 0 : i32
    return %c0_i32, %c0_i32_0 : i32, i32
  }
  func.func @transform_2(%arg0: i32) -> (i32, i32) {
    %c0_i32 = arith.constant 0 : i32
    %c0_i32_0 = arith.constant 0 : i32
    %c0_i32_1 = arith.constant 0 : i32
    return %c0_i32, %c0_i32_0 : i32, i32
  }
  func.func @transform_3(%arg0: i32) -> (i32, i32) {
    %c0_i32 = arith.constant 0 : i32
    %c0_i32_0 = arith.constant 0 : i32
    %c0_i32_1 = arith.constant 0 : i32
    return %c0_i32, %c0_i32_0 : i32, i32
  }
  func.func @transform_4(%arg0: i32) -> (i32, i32) {
    %c0_i32 = arith.constant 0 : i32
    %c0_i32_0 = arith.constant 0 : i32
    %c0_i32_1 = arith.constant 0 : i32
    return %c0_i32, %c0_i32_0 : i32, i32
  }
  func.func @transform_5(%arg0: i32) -> (i32, i32) {
    %c0_i32 = arith.constant 0 : i32
    %c0_i32_0 = arith.constant 0 : i32
    %c0_i32_1 = arith.constant 0 : i32
    return %c0_i32, %c0_i32_0 : i32, i32
  }
  func.func @transform_6(%arg0: i32) -> (i32, i32) {
    %c0_i32 = arith.constant 0 : i32
    %c0_i32_0 = arith.constant 0 : i32
    %c0_i32_1 = arith.constant 0 : i32
    return %c0_i32, %c0_i32_0 : i32, i32
  }
  func.func @transform_7(%arg0: i32) -> (i32, i32) {
    %c0_i32 = arith.constant 0 : i32
    %c0_i32_0 = arith.constant 0 : i32
    return %arg0, %c0_i32 : i32, i32
  }
}

</mosaic_0001>

<bundles_post_ra>
// kernel: tpu_custom_call.1
= control target key start
LH: loop header
LB: loop body
LE: loop exit
PB: predicated region body
PF: predicated region fallthrough
CT: control target
= control target key end

     0   :  { %12 = vsyncpa [#allocation3], 0  ;;  %s745_s0 = inlined_call_operand.hbm [shape: f32[16,128], index: 0, kind: input, shape index: {}]   ;;  %s746_s1 = inlined_call_operand.hbm [shape: f32[128,128], index: 1, kind: input, shape index: {}]   ;;  %s747_s2 = inlined_call_operand.vmem [shape: f32[1,128], index: 2, kind: input, shape index: {}]   ;;  %s748_s3 = inlined_call_operand.hbm [shape: f32[128,128], index: 3, kind: input, shape index: {}]   ;;  %s749_s4 = inlined_call_operand.vmem [shape: f32[1,128], index: 4, kind: input, shape index: {}]   ;;  %s750_s5 = inlined_call_operand.vmem [shape: f32[1,128], index: 5, kind: input, shape index: {}]   ;;  %s751_s6 = inlined_call_operand.vmem [shape: f32[1,128], index: 6, kind: input, shape index: {}]   ;;  %s752_s7 = inlined_call_operand.hbm [shape: f32[16,128], index: 7, kind: output, shape index: {}]  }
   0x1   :  { %13 = vsyncpa [#allocation6], 0 }
   0x2   :  { %14 = vsyncpa [#allocation4], 0  ;;  %s616_s24 = smov [#allocation5]   ;;  %s617_s26 = smov [#allocation2]  }
   0x3   :  { %s32_s25 = sshll.u32 %s616_s24, 4  ;;  %s20_s27 = sshll.u32 %s617_s26, 4  ;;  %s33_s25 = int_to_ptr.vmem [resolvable:$true] %s32_s25  ;;  %s662_s27 = int_to_ptr.vmem [resolvable:$true] %s20_s27 }
   0x4   :  { %s522_s30 = scalar_lea.hbm %s746_s1, 2048 }
   0x5   :  { %p523_p0 = scmp.ne.s32.totalorder %s746_s1, %s522_s30  ;;  %p526_p1 = scmp.lt.u32.totalorder %s522_s30, %s746_s1 }
   0x7   :  { %p528_p2 = pnand %p526_p1, %p523_p0 }
   0x9   :  { %531 = shalt.err (!%p528_p2)
}
   0xa   :  { %s532_s12 = scalar_lea.vmem %s33_s25, 2048  ;;  %p537_p4 = scmp.lt.s32.totalorder %s33_s25, %s33_s25 }
   0xb   :  { %p533_p3 = scmp.ne.s32.totalorder %s33_s25, %s532_s12  ;;  %p538_p5 = scmp.lt.s32.totalorder %s532_s12, %s532_s12 }
   0xd   :  { %p539_p6 = por %p538_p5, %p537_p4 }
   0xf   :  { %p540_p7 = pnand %p539_p6, %p533_p3 }
  0x11   :  { %543 = shalt.err (!%p540_p7)
}
  0x12   :  { %s618_s13 = smov 128   ;;  %s619_s14 = smov 8  }
  0x13   :  { %38 = dma.hbm_to_vmem [thread:$0]  %s746_s1, 2048, %s33_s25, [#allocation6], %s618_s13, %s618_s13, %s619_s14  }
  0x14   :  { %s544_s19 = scalar_lea.hbm %s745_s0, 256 }
  0x15   :  { %p545_p8 = scmp.ne.s32.totalorder %s745_s0, %s544_s19  ;;  %p548_p9 = scmp.lt.u32.totalorder %s544_s19, %s745_s0 }
  0x17   :  { %p550_p10 = pnand %p548_p9, %p545_p8 }
  0x19   :  { %553 = shalt.err (!%p550_p10)
}
  0x1a   :  { %s554_s24 = scalar_lea.vmem %s662_s27, 256  ;;  %p559_p12 = scmp.lt.s32.totalorder %s662_s27, %s662_s27 }
  0x1b   :  { %p555_p11 = scmp.ne.s32.totalorder %s662_s27, %s554_s24  ;;  %p560_p13 = scmp.lt.s32.totalorder %s554_s24, %s554_s24 }
  0x1d   :  { %p561_p0 = por %p560_p13, %p559_p12 }
  0x1f   :  { %p562_p1 = pnand %p561_p0, %p555_p11 }
  0x21   :  { %565 = shalt.err (!%p562_p1)
}
  0x22   :  { %26 = dma.hbm_to_vmem [thread:$0]  %s745_s0, 256, %s662_s27, [#allocation3], %s618_s13, %s618_s13, %s619_s14  }
  0x23   :  { %s620_s26 = smov [#allocation7]   ;;  %s566_s8 = scalar_lea.hbm %s748_s3, 2048 }
  0x24   :  { %s46_s28 = sshll.u32 %s620_s26, 4  ;;  %p567_p2 = scmp.ne.s32.totalorder %s748_s3, %s566_s8  ;;  %s47_s28 = int_to_ptr.vmem [resolvable:$true] %s46_s28 }
  0x25   :  { %p570_p3 = scmp.lt.u32.totalorder %s566_s8, %s748_s3 }
  0x27   :  { %p572_p4 = pnand %p570_p3, %p567_p2 }
  0x29   :  { %575 = shalt.err (!%p572_p4)
}
  0x2a   :  { %s576_s15 = scalar_lea.vmem %s47_s28, 2048  ;;  %p581_p6 = scmp.lt.s32.totalorder %s47_s28, %s47_s28 }
  0x2b   :  { %p577_p5 = scmp.ne.s32.totalorder %s47_s28, %s576_s15  ;;  %p582_p7 = scmp.lt.s32.totalorder %s576_s15, %s576_s15 }
  0x2d   :  { %p583_p8 = por %p582_p7, %p581_p6 }
  0x2f   :  { %p584_p9 = pnand %p583_p8, %p577_p5 }
  0x31   :  { %587 = shalt.err (!%p584_p9)
}
  0x32   :  { %52 = dma.hbm_to_vmem [thread:$0]  %s748_s3, 2048, %s47_s28, [#allocation6], %s618_s13, %s618_s13, %s619_s14  }
  0x33   :  { %610 = dma.done.wait [#allocation3], 256  }
  0x34   :  { %611 = vsyncadd [#allocation3], 4294967040 }
  0x35   :  { %612 = dma.done.wait [#allocation6], 4096  }
  0x36   :  { %613 = vsyncadd [#allocation6], 4294963200  ;;  %v79_v0 = vld [vmem:[#allocation5] sm:$0xff]  ;;  %v80_v1 = vld [vmem:[#allocation5 + $0x8] sm:$0xff]  ;;  %s621_s21 = smov [#allocation8]  }
  0x37   :  { %v81_v2 = vld [vmem:[#allocation5 + $0x10] sm:$0xff]  ;;  %v448_v3 = vpack.c.bf16 %v80_v1, %v79_v0  ;;  %v82_v4 = vld [vmem:[#allocation5 + $0x18] sm:$0xff]  ;;  %v83_v6 = vld [vmem:[#allocation5 + $0x20] sm:$0xff]  ;;  %s325_s22 = sshll.u32 %s621_s21, 4  ;;  %s326_s22 = int_to_ptr.vmem [resolvable:$true] %s325_s22 }
  0x38   :  { %v452_v5 = vpack.c.bf16 %v82_v4, %v81_v2  ;;  %v84_v7 = vld [vmem:[#allocation5 + $0x28] sm:$0xff]  ;;  %v85_v9 = vld [vmem:[#allocation5 + $0x30] sm:$0xff]  ;;  %v86_v11 = vld [vmem:[#allocation5 + $0x38] sm:$0xff]  ;;  %s588_s23 = scalar_lea.vmem %s326_s22, 256  ;;  %p593_p11 = scmp.lt.s32.totalorder %s326_s22, %s326_s22 }
  0x39   :  { %449 = vmatprep.subr.bf16.mxu0 %v448_v3  ;;  %v456_v8 = vpack.c.bf16 %v84_v7, %v83_v6  ;;  %v714_v10 = vld [vmem:[#allocation2] sm:$0xff]  ;;  %v179_v12 = vld [vmem:[#allocation7] sm:$0xff]  ;;  %v180_v13 = vld [vmem:[#allocation7 + $0x8] sm:$0xff]  ;;  %v460_v20 = vpack.c.bf16 %v86_v11, %v85_v9  ;;  %p589_p10 = scmp.ne.s32.totalorder %s326_s22, %s588_s23  ;;  %p594_p12 = scmp.lt.s32.totalorder %s588_s23, %s588_s23 }
  0x3a   :  { %451 = vmatpush3.bf16.msra.mxu0 %v448_v3  ;;  %410 = vmatprep.mubr.f32.mxu0 %v714_v10  ;;  %v480_v14 = vpack.c.bf16 %v180_v13, %v179_v12  ;;  %v181_v15 = vld [vmem:[#allocation7 + $0x10] sm:$0xff]  ;;  %v182_v16 = vld [vmem:[#allocation7 + $0x18] sm:$0xff]  ;;  %v183_v18 = vld [vmem:[#allocation7 + $0x20] sm:$0xff] }
  0x3b   :  { %453 = vmatprep.subr.bf16.mxu0 %v452_v5  ;;  %v484_v17 = vpack.c.bf16 %v182_v16, %v181_v15  ;;  %v184_v19 = vld [vmem:[#allocation7 + $0x28] sm:$0xff]  ;;  %v87_v21 = vld [vmem:[#allocation5 + $0x40] sm:$0xff]  ;;  %v185_v24 = vld [vmem:[#allocation7 + $0x30] sm:$0xff]  ;;  %p595_p13 = por %p594_p12, %p593_p11 }
  0x3c   :  { %481 = vmatprep.subr.bf16.mxu1 %v480_v14  ;;  %v88_v22 = vld [vmem:[#allocation5 + $0x48] sm:$0xff]  ;;  %v488_v23 = vpack.c.bf16 %v184_v19, %v183_v18  ;;  %v186_v25 = vld [vmem:[#allocation7 + $0x38] sm:$0xff]  ;;  %v89_v27 = vld [vmem:[#allocation5 + $0x50] sm:$0xff] }
  0x3d   :  { %483 = vmatpush3.bf16.msra.mxu1 %v480_v14  ;;  %v464_v26 = vpack.c.bf16 %v88_v22, %v87_v21  ;;  %v90_v28 = vld [vmem:[#allocation5 + $0x58] sm:$0xff]  ;;  %v492_v29 = vpack.c.bf16 %v186_v25, %v185_v24  ;;  %v187_v30 = vld [vmem:[#allocation7 + $0x40] sm:$0xff]  ;;  %v188_v31 = vld [vmem:[#allocation7 + $0x48] sm:$0xff]  ;;  %p596_p0 = pnand %p595_p13, %p589_p10 }
  0x3e   :  { %455 = vmatpush3.bf16.msra.mxu0 %v452_v5  ;;  %485 = vmatprep.subr.bf16.mxu1 %v484_v17  ;;  %v468_v32 = vpack.c.bf16 %v90_v28, %v89_v27  ;;  %v91_v33 = vld [vmem:[#allocation5 + $0x60] sm:$0xff]  ;;  %v92_v34 = vld [vmem:[#allocation5 + $0x68] sm:$0xff]  ;;  %v496_v35 = vpack.c.bf16 %v188_v31, %v187_v30  ;;  %v189_v36 = vld [vmem:[#allocation7 + $0x50] sm:$0xff] }
  0x3f   :  { %457 = vmatprep.subr.bf16.mxu0 %v456_v8  ;;  %v190_v37 = vld [vmem:[#allocation7 + $0x58] sm:$0xff]  ;;  %v472_v38 = vpack.c.bf16 %v92_v34, %v91_v33  ;;  %v93_v39 = vld [vmem:[#allocation5 + $0x70] sm:$0xff]  ;;  %v191_v42 = vld [vmem:[#allocation7 + $0x60] sm:$0xff] }
  0x40   :  { %v94_v40 = vld [vmem:[#allocation5 + $0x78] sm:$0xff]  ;;  %v500_v41 = vpack.c.bf16 %v190_v37, %v189_v36  ;;  %v192_v43 = vld [vmem:[#allocation7 + $0x68] sm:$0xff]  ;;  %v193_v47 = vld [vmem:[#allocation7 + $0x70] sm:$0xff] }
  0x41   :  { %487 = vmatpush3.bf16.msra.mxu1 %v484_v17  ;;  %v476_v44 = vpack.c.bf16 %v94_v40, %v93_v39  ;;  %v504_v45 = vpack.c.bf16 %v192_v43, %v191_v42  ;;  %v69_v46 = vld [vmem:[#allocation2 + $0x8] sm:$0xff]  ;;  %v339_v50 = vld [vmem:[%s747_s2] ss:$0 sm:$0xff] }
  0x42   :  { %459 = vmatpush3.bf16.msra.mxu0 %v456_v8  ;;  %489 = vmatprep.subr.bf16.mxu1 %v488_v23  ;;  %v194_v48 = vld [vmem:[#allocation7 + $0x78] sm:$0xff]  ;;  %v338_v57 = vld [vmem:[%s749_s4] ss:$0 sm:$0xff] }
  0x43   :  { %461 = vmatprep.subr.bf16.mxu0 %v460_v20  ;;  %v508_v49 = vpack.c.bf16 %v194_v48, %v193_v47  ;;  %v77_v58 = vadd.f32 %v338_v57, %v714_v10  ;;  %v78_v59 = vadd.f32 %v338_v57, %v69_v46  ;;  %v341_v22 = vld [vmem:[%s751_s6] ss:$0 sm:$0xff] }
  0x45   :  { %491 = vmatpush3.bf16.msra.mxu1 %v488_v23 }
  0x46   :  { %463 = vmatpush3.bf16.msra.mxu0 %v460_v20  ;;  %493 = vmatprep.subr.bf16.mxu1 %v492_v29  ;;  %v340_v20 = vld [vmem:[%s750_s5] ss:$0 sm:$0xff] }
  0x47   :  { %465 = vmatprep.subr.bf16.mxu0 %v464_v26 }
  0x49   :  { %495 = vmatpush3.bf16.msra.mxu1 %v492_v29 }
  0x4a   :  { %467 = vmatpush3.bf16.msra.mxu0 %v464_v26  ;;  %497 = vmatprep.subr.bf16.mxu1 %v496_v35 }
  0x4b   :  { %469 = vmatprep.subr.bf16.mxu0 %v468_v32 }
  0x4d   :  { %499 = vmatpush3.bf16.msra.mxu1 %v496_v35 }
  0x4e   :  { %471 = vmatpush3.bf16.msra.mxu0 %v468_v32  ;;  %501 = vmatprep.subr.bf16.mxu1 %v500_v41 }
  0x4f   :  { %473 = vmatprep.subr.bf16.mxu0 %v472_v38 }
  0x51   :  { %503 = vmatpush3.bf16.msra.mxu1 %v500_v41 }
  0x52   :  { %475 = vmatpush3.bf16.msra.mxu0 %v472_v38  ;;  %505 = vmatprep.subr.bf16.mxu1 %v504_v45 }
  0x53   :  { %477 = vmatprep.subr.bf16.mxu0 %v476_v44 }
  0x55   :  { %507 = vmatpush3.bf16.msra.mxu1 %v504_v45 }
  0x56   :  { %479 = vmatpush3.bf16.msra.mxu0 %v476_v44  ;;  %509 = vmatprep.subr.bf16.mxu1 %v508_v49 }
  0x59   :  { %411 = vmatmul.mubr.f32.vlgmr.msra.gmra.mrb[0].mxu0 %v69_v46  ;;  %511 = vmatpush3.bf16.msra.mxu1 %v508_v49 }
 0x12c   :  { %v412_v51 = vpop.f32.mrb[0].mxu0 }
 0x12d   :  { %v174_v52 = vadd.f32 %v412_v51, %v339_v50  ;;  %v168_v53 = vpop.f32.mrb[1].mxu0 }
 0x12e   :  { %v169_v54 = vadd.f32 %v339_v50, %v168_v53 }
 0x12f   :  { %v178_v56 = vmax.f32 %v174_v52, 0.0 }
 0x130   :  { %v177_v55 = vmax.f32 %v169_v54, 0.0 }
 0x132   :  { %445 = vmatprep.mubr.f32.mxu1 %v177_v55 }
 0x133   :  { %446 = vmatmul.mubr.f32.vlgmr.msra.gmra.mrb[0].mxu1 %v178_v56 }
 0x206   :  { %v447_v60 = vpop.f32.mrb[0].mxu1 }
 0x207   :  { %v261_v61 = vpop.f32.mrb[1].mxu1  ;;  %v271_v63 = vadd.f32 %v447_v60, %v78_v59 }
 0x208   :  { %v270_v62 = vadd.f32 %v261_v61, %v77_v58 }
 0x209   :  { %v279_v1 = vmul.f32 %v271_v63, %v271_v63 }
 0x20a   :  { %274 = vadd.xlane.f32.xlu0 %v270_v62  ;;  %v278_v0 = vmul.f32 %v270_v62, %v270_v62 }
 0x20c   :  { %280 = vadd.xlane.f32.xlu1 %v278_v0 }
 0x20e   :  { %276 = vadd.xlane.f32.xlu0 %v271_v63 }
 0x210   :  { %282 = vadd.xlane.f32.xlu1 %v279_v1 }
 0x297   :  { %v275_v2 = vpop.xlane.xlu0 %274 }
 0x298   :  { %v284_v3 = vmul.f32 0.03125, %v275_v2 }
 0x299   :  { %v281_v4 = vpop.xlane.xlu1 %280 }
 0x29a   :  { %v288_v5 = vmul.f32 %v284_v3, %v284_v3  ;;  %v286_v6 = vmul.f32 0.03125, %v281_v4  ;;  %v294_v18 = vsub.f32 %v270_v62, %v284_v3 }
 0x29b   :  { %v277_v7 = vpop.xlane.xlu0 %276 }
 0x29c   :  { %v290_v8 = vsub.f32 %v286_v6, %v288_v5  ;;  %v285_v9 = vmul.f32 0.03125, %v277_v7 }
 0x29d   :  { %v283_v10 = vpop.xlane.xlu1 %282 }
 0x29e   :  { %v292_v11 = vmax.f32 %v290_v8, 0.0  ;;  %v289_v12 = vmul.f32 %v285_v9, %v285_v9  ;;  %v287_v13 = vmul.f32 0.03125, %v283_v10  ;;  %v295_v23 = vsub.f32 %v271_v63, %v285_v9 }
 0x2a0   :  { %v296_v14 = vadd.f32 1e-05, %v292_v11  ;;  %v291_v15 = vsub.f32 %v287_v13, %v289_v12 }
 0x2a2   :  { %518 = vrsqrt.f32 %v296_v14  ;;  %v293_v16 = vmax.f32 %v291_v15, 0.0 }
 0x2a4   :  { %v297_v17 = vadd.f32 1e-05, %v293_v16 }
 0x2a6   :  { %520 = vrsqrt.f32 %v297_v17 }
 0x2ac   :  { %v519_v19 = vpop.eup %518 }
 0x2ad   :  { %v300_v21 = vmul.f32 %v519_v19, %v294_v18 }
 0x2af   :  { %v308_v24 = vmul.f32 %v340_v20, %v300_v21 }
 0x2b0   :  { %v521_v25 = vpop.eup %520 }
 0x2b1   :  { %v301_v26 = vmul.f32 %v521_v25, %v295_v23  ;;  %v316_v27 = vadd.f32 %v341_v22, %v308_v24 }
 0x2b3   :  { %v309_v28 = vmul.f32 %v340_v20, %v301_v26  ;;  %318 = vst [vmem:[#allocation8] sm:$0xff] %v316_v27 }
 0x2b5   :  { %v317_v29 = vadd.f32 %v341_v22, %v309_v28 }
 0x2b7   :  { %319 = vst [vmem:[#allocation8 + $0x8] sm:$0xff] %v317_v29 }
 0x2b8   :  { %599 = shalt.err (!%p596_p0)
}
 0x2b9   :  { %s600_s24 = scalar_lea.hbm %s752_s7, 256 }
 0x2ba   :  { %p601_p1 = scmp.ne.s32.totalorder %s752_s7, %s600_s24  ;;  %p604_p2 = scmp.lt.u32.totalorder %s600_s24, %s752_s7 }
 0x2bc   :  { %p606_p3 = pnand %p604_p2, %p601_p1 }
 0x2be   :  { %609 = shalt.err (!%p606_p3)
}
 0x2bf   :  { %331 = dma.vmem_to_hbm [thread:$0]  %s326_s22, 256, %s752_s7, [#allocation4], %s618_s13, %s618_s13, %s619_s14  }
 0x2c0   :  { %614 = dma.done.wait [#allocation4], 256  }
 0x2c1   :  { %615 = vsyncadd [#allocation4], 4294967040 }
 0x2c2   :  { %335 = vsyncpa [#allocation3], 1 }
 0x2c3   :  { %336 = vsyncpa [#allocation6], 1 }
 0x2c4   :  { %337 = vsyncpa [#allocation4], 1 }

// kernel: tpu_custom_call.1
= control target key start
LH: loop header
LB: loop body
LE: loop exit
PB: predicated region body
PF: predicated region fallthrough
CT: control target
= control target key end

     0   :  { %12 = vsyncpa [#allocation3], 0  ;;  %s745_s0 = inlined_call_operand.hbm [shape: f32[16,128], index: 0, kind: input, shape index: {}]   ;;  %s746_s1 = inlined_call_operand.hbm [shape: f32[128,128], index: 1, kind: input, shape index: {}]   ;;  %s747_s2 = inlined_call_operand.vmem [shape: f32[1,128], index: 2, kind: input, shape index: {}]   ;;  %s748_s3 = inlined_call_operand.hbm [shape: f32[128,128], index: 3, kind: input, shape index: {}]   ;;  %s749_s4 = inlined_call_operand.vmem [shape: f32[1,128], index: 4, kind: input, shape index: {}]   ;;  %s750_s5 = inlined_call_operand.vmem [shape: f32[1,128], index: 5, kind: input, shape index: {}]   ;;  %s751_s6 = inlined_call_operand.vmem [shape: f32[1,128], index: 6, kind: input, shape index: {}]   ;;  %s752_s7 = inlined_call_operand.hbm [shape: f32[16,128], index: 7, kind: output, shape index: {}]  }
   0x1   :  { %13 = vsyncpa [#allocation6], 0 }
   0x2   :  { %14 = vsyncpa [#allocation4], 0  ;;  %s616_s24 = smov [#allocation5]   ;;  %s617_s26 = smov [#allocation2]  }
   0x3   :  { %s32_s25 = sshll.u32 %s616_s24, 4  ;;  %s20_s27 = sshll.u32 %s617_s26, 4  ;;  %s33_s25 = int_to_ptr.vmem [resolvable:$true] %s32_s25  ;;  %s662_s27 = int_to_ptr.vmem [resolvable:$true] %s20_s27 }
   0x4   :  { %s522_s30 = scalar_lea.hbm %s746_s1, 2048 }
   0x5   :  { %p523_p0 = scmp.ne.s32.totalorder %s746_s1, %s522_s30  ;;  %p526_p1 = scmp.lt.u32.totalorder %s522_s30, %s746_s1 }
   0x7   :  { %p528_p2 = pnand %p526_p1, %p523_p0 }
   0x9   :  { %531 = shalt.err (!%p528_p2)
}
   0xa   :  { %s532_s12 = scalar_lea.vmem %s33_s25, 2048  ;;  %p537_p4 = scmp.lt.s32.totalorder %s33_s25, %s33_s25 }
   0xb   :  { %p533_p3 = scmp.ne.s32.totalorder %s33_s25, %s532_s12  ;;  %p538_p5 = scmp.lt.s32.totalorder %s532_s12, %s532_s12 }
   0xd   :  { %p539_p6 = por %p538_p5, %p537_p4 }
   0xf   :  { %p540_p7 = pnand %p539_p6, %p533_p3 }
  0x11   :  { %543 = shalt.err (!%p540_p7)
}
  0x12   :  { %s618_s13 = smov 128   ;;  %s619_s14 = smov 8  }
  0x13   :  { %38 = dma.hbm_to_vmem [thread:$0]  %s746_s1, 2048, %s33_s25, [#allocation6], %s618_s13, %s618_s13, %s619_s14  }
  0x14   :  { %s544_s19 = scalar_lea.hbm %s745_s0, 256 }
  0x15   :  { %p545_p8 = scmp.ne.s32.totalorder %s745_s0, %s544_s19  ;;  %p548_p9 = scmp.lt.u32.totalorder %s544_s19, %s745_s0 }
  0x17   :  { %p550_p10 = pnand %p548_p9, %p545_p8 }
  0x19   :  { %553 = shalt.err (!%p550_p10)
}
  0x1a   :  { %s554_s24 = scalar_lea.vmem %s662_s27, 256  ;;  %p559_p12 = scmp.lt.s32.totalorder %s662_s27, %s662_s27 }
  0x1b   :  { %p555_p11 = scmp.ne.s32.totalorder %s662_s27, %s554_s24  ;;  %p560_p13 = scmp.lt.s32.totalorder %s554_s24, %s554_s24 }
  0x1d   :  { %p561_p0 = por %p560_p13, %p559_p12 }
  0x1f   :  { %p562_p1 = pnand %p561_p0, %p555_p11 }
  0x21   :  { %565 = shalt.err (!%p562_p1)
}
  0x22   :  { %26 = dma.hbm_to_vmem [thread:$0]  %s745_s0, 256, %s662_s27, [#allocation3], %s618_s13, %s618_s13, %s619_s14  }
  0x23   :  { %s620_s26 = smov [#allocation7]   ;;  %s566_s8 = scalar_lea.hbm %s748_s3, 2048 }
  0x24   :  { %s46_s28 = sshll.u32 %s620_s26, 4  ;;  %p567_p2 = scmp.ne.s32.totalorder %s748_s3, %s566_s8  ;;  %s47_s28 = int_to_ptr.vmem [resolvable:$true] %s46_s28 }
  0x25   :  { %p570_p3 = scmp.lt.u32.totalorder %s566_s8, %s748_s3 }
  0x27   :  { %p572_p4 = pnand %p570_p3, %p567_p2 }
  0x29   :  { %575 = shalt.err (!%p572_p4)
}
  0x2a   :  { %s576_s15 = scalar_lea.vmem %s47_s28, 2048  ;;  %p581_p6 = scmp.lt.s32.totalorder %s47_s28, %s47_s28 }
  0x2b   :  { %p577_p5 = scmp.ne.s32.totalorder %s47_s28, %s576_s15  ;;  %p582_p7 = scmp.lt.s32.totalorder %s576_s15, %s576_s15 }
  0x2d   :  { %p583_p8 = por %p582_p7, %p581_p6 }
  0x2f   :  { %p584_p9 = pnand %p583_p8, %p577_p5 }
  0x31   :  { %587 = shalt.err (!%p584_p9)
}
  0x32   :  { %52 = dma.hbm_to_vmem [thread:$0]  %s748_s3, 2048, %s47_s28, [#allocation6], %s618_s13, %s618_s13, %s619_s14  }
  0x33   :  { %610 = dma.done.wait [#allocation3], 256  }
  0x34   :  { %611 = vsyncadd [#allocation3], 4294967040 }
  0x35   :  { %612 = dma.done.wait [#allocation6], 4096  }
  0x36   :  { %613 = vsyncadd [#allocation6], 4294963200  ;;  %v79_v0 = vld [vmem:[#allocation5] sm:$0xff]  ;;  %v80_v1 = vld [vmem:[#allocation5 + $0x8] sm:$0xff]  ;;  %s621_s21 = smov [#allocation8]  }
  0x37   :  { %v81_v2 = vld [vmem:[#allocation5 + $0x10] sm:$0xff]  ;;  %v448_v3 = vpack.c.bf16 %v80_v1, %v79_v0  ;;  %v82_v4 = vld [vmem:[#allocation5 + $0x18] sm:$0xff]  ;;  %v83_v6 = vld [vmem:[#allocation5 + $0x20] sm:$0xff]  ;;  %s325_s22 = sshll.u32 %s621_s21, 4  ;;  %s326_s22 = int_to_ptr.vmem [resolvable:$true] %s325_s22 }
  0x38   :  { %v452_v5 = vpack.c.bf16 %v82_v4, %v81_v2  ;;  %v84_v7 = vld [vmem:[#allocation5 + $0x28] sm:$0xff]  ;;  %v85_v9 = vld [vmem:[#allocation5 + $0x30] sm:$0xff]  ;;  %v86_v11 = vld [vmem:[#allocation5 + $0x38] sm:$0xff]  ;;  %s588_s23 = scalar_lea.vmem %s326_s22, 256  ;;  %p593_p11 = scmp.lt.s32.totalorder %s326_s22, %s326_s22 }
  0x39   :  { %449 = vmatprep.subr.bf16.mxu0 %v448_v3  ;;  %v456_v8 = vpack.c.bf16 %v84_v7, %v83_v6  ;;  %v714_v10 = vld [vmem:[#allocation2] sm:$0xff]  ;;  %v179_v12 = vld [vmem:[#allocation7] sm:$0xff]  ;;  %v180_v13 = vld [vmem:[#allocation7 + $0x8] sm:$0xff]  ;;  %v460_v20 = vpack.c.bf16 %v86_v11, %v85_v9  ;;  %p589_p10 = scmp.ne.s32.totalorder %s326_s22, %s588_s23  ;;  %p594_p12 = scmp.lt.s32.totalorder %s588_s23, %s588_s23 }
  0x3a   :  { %451 = vmatpush3.bf16.msra.mxu0 %v448_v3  ;;  %410 = vmatprep.mubr.f32.mxu0 %v714_v10  ;;  %v480_v14 = vpack.c.bf16 %v180_v13, %v179_v12  ;;  %v181_v15 = vld [vmem:[#allocation7 + $0x10] sm:$0xff]  ;;  %v182_v16 = vld [vmem:[#allocation7 + $0x18] sm:$0xff]  ;;  %v183_v18 = vld [vmem:[#allocation7 + $0x20] sm:$0xff] }
  0x3b   :  { %453 = vmatprep.subr.bf16.mxu0 %v452_v5  ;;  %v484_v17 = vpack.c.bf16 %v182_v16, %v181_v15  ;;  %v184_v19 = vld [vmem:[#allocation7 + $0x28] sm:$0xff]  ;;  %v87_v21 = vld [vmem:[#allocation5 + $0x40] sm:$0xff]  ;;  %v185_v24 = vld [vmem:[#allocation7 + $0x30] sm:$0xff]  ;;  %p595_p13 = por %p594_p12, %p593_p11 }
  0x3c   :  { %481 = vmatprep.subr.bf16.mxu1 %v480_v14  ;;  %v88_v22 = vld [vmem:[#allocation5 + $0x48] sm:$0xff]  ;;  %v488_v23 = vpack.c.bf16 %v184_v19, %v183_v18  ;;  %v186_v25 = vld [vmem:[#allocation7 + $0x38] sm:$0xff]  ;;  %v89_v27 = vld [vmem:[#allocation5 + $0x50] sm:$0xff] }
  0x3d   :  { %483 = vmatpush3.bf16.msra.mxu1 %v480_v14  ;;  %v464_v26 = vpack.c.bf16 %v88_v22, %v87_v21  ;;  %v90_v28 = vld [vmem:[#allocation5 + $0x58] sm:$0xff]  ;;  %v492_v29 = vpack.c.bf16 %v186_v25, %v185_v24  ;;  %v187_v30 = vld [vmem:[#allocation7 + $0x40] sm:$0xff]  ;;  %v188_v31 = vld [vmem:[#allocation7 + $0x48] sm:$0xff]  ;;  %p596_p0 = pnand %p595_p13, %p589_p10 }
  0x3e   :  { %455 = vmatpush3.bf16.msra.mxu0 %v452_v5  ;;  %485 = vmatprep.subr.bf16.mxu1 %v484_v17  ;;  %v468_v32 = vpack.c.bf16 %v90_v28, %v89_v27  ;;  %v91_v33 = vld [vmem:[#allocation5 + $0x60] sm:$0xff]  ;;  %v92_v34 = vld [vmem:[#allocation5 + $0x68] sm:$0xff]  ;;  %v496_v35 = vpack.c.bf16 %v188_v31, %v187_v30  ;;  %v189_v36 = vld [vmem:[#allocation7 + $0x50] sm:$0xff] }
  0x3f   :  { %457 = vmatprep.subr.bf16.mxu0 %v456_v8  ;;  %v190_v37 = vld [vmem:[#allocation7 + $0x58] sm:$0xff]  ;;  %v472_v38 = vpack.c.bf16 %v92_v34, %v91_v33  ;;  %v93_v39 = vld [vmem:[#allocation5 + $0x70] sm:$0xff]  ;;  %v191_v42 = vld [vmem:[#allocation7 + $0x60] sm:$0xff] }
  0x40   :  { %v94_v40 = vld [vmem:[#allocation5 + $0x78] sm:$0xff]  ;;  %v500_v41 = vpack.c.bf16 %v190_v37, %v189_v36  ;;  %v192_v43 = vld [vmem:[#allocation7 + $0x68] sm:$0xff]  ;;  %v193_v47 = vld [vmem:[#allocation7 + $0x70] sm:$0xff] }
  0x41   :  { %487 = vmatpush3.bf16.msra.mxu1 %v484_v17  ;;  %v476_v44 = vpack.c.bf16 %v94_v40, %v93_v39  ;;  %v504_v45 = vpack.c.bf16 %v192_v43, %v191_v42  ;;  %v69_v46 = vld [vmem:[#allocation2 + $0x8] sm:$0xff]  ;;  %v339_v50 = vld [vmem:[%s747_s2] ss:$0 sm:$0xff] }
  0x42   :  { %459 = vmatpush3.bf16.msra.mxu0 %v456_v8  ;;  %489 = vmatprep.subr.bf16.mxu1 %v488_v23  ;;  %v194_v48 = vld [vmem:[#allocation7 + $0x78] sm:$0xff]  ;;  %v338_v57 = vld [vmem:[%s749_s4] ss:$0 sm:$0xff] }
  0x43   :  { %461 = vmatprep.subr.bf16.mxu0 %v460_v20  ;;  %v508_v49 = vpack.c.bf16 %v194_v48, %v193_v47  ;;  %v77_v58 = vadd.f32 %v338_v57, %v714_v10  ;;  %v78_v59 = vadd.f32 %v338_v57, %v69_v46  ;;  %v341_v22 = vld [vmem:[%s751_s6] ss:$0 sm:$0xff] }
  0x45   :  { %491 = vmatpush3.bf16.msra.mxu1 %v488_v23 }
  0x46   :  { %463 = vmatpush3.bf16.msra.mxu0 %v460_v20  ;;  %493 = vmatprep.subr.bf16.mxu1 %v492_v29  ;;  %v340_v20 = vld [vmem:[%s750_s5] ss:$0 sm:$0xff] }
  0x47   :  { %465 = vmatprep.subr.bf16.mxu0 %v464_v26 }
  0x49   :  { %495 = vmatpush3.bf16.msra.mxu1 %v492_v29 }
  0x4a   :  { %467 = vmatpush3.bf16.msra.mxu0 %v464_v26  ;;  %497 = vmatprep.subr.bf16.mxu1 %v496_v35 }
  0x4b   :  { %469 = vmatprep.subr.bf16.mxu0 %v468_v32 }
  0x4d   :  { %499 = vmatpush3.bf16.msra.mxu1 %v496_v35 }
  0x4e   :  { %471 = vmatpush3.bf16.msra.mxu0 %v468_v32  ;;  %501 = vmatprep.subr.bf16.mxu1 %v500_v41 }
  0x4f   :  { %473 = vmatprep.subr.bf16.mxu0 %v472_v38 }
  0x51   :  { %503 = vmatpush3.bf16.msra.mxu1 %v500_v41 }
  0x52   :  { %475 = vmatpush3.bf16.msra.mxu0 %v472_v38  ;;  %505 = vmatprep.subr.bf16.mxu1 %v504_v45 }
  0x53   :  { %477 = vmatprep.subr.bf16.mxu0 %v476_v44 }
  0x55   :  { %507 = vmatpush3.bf16.msra.mxu1 %v504_v45 }
  0x56   :  { %479 = vmatpush3.bf16.msra.mxu0 %v476_v44  ;;  %509 = vmatprep.subr.bf16.mxu1 %v508_v49 }
  0x59   :  { %411 = vmatmul.mubr.f32.vlgmr.msra.gmra.mrb[0].mxu0 %v69_v46  ;;  %511 = vmatpush3.bf16.msra.mxu1 %v508_v49 }
 0x12c   :  { %v412_v51 = vpop.f32.mrb[0].mxu0 }
 0x12d   :  { %v174_v52 = vadd.f32 %v412_v51, %v339_v50  ;;  %v168_v53 = vpop.f32.mrb[1].mxu0 }
 0x12e   :  { %v169_v54 = vadd.f32 %v339_v50, %v168_v53 }
 0x12f   :  { %v178_v56 = vmax.f32 %v174_v52, 0.0 }
 0x130   :  { %v177_v55 = vmax.f32 %v169_v54, 0.0 }
 0x132   :  { %445 = vmatprep.mubr.f32.mxu1 %v177_v55 }
 0x133   :  { %446 = vmatmul.mubr.f32.vlgmr.msra.gmra.mrb[0].mxu1 %v178_v56 }
 0x206   :  { %v447_v60 = vpop.f32.mrb[0].mxu1 }
 0x207   :  { %v261_v61 = vpop.f32.mrb[1].mxu1  ;;  %v271_v63 = vadd.f32 %v447_v60, %v78_v59 }
 0x208   :  { %v270_v62 = vadd.f32 %v261_v61, %v77_v58 }
 0x209   :  { %v279_v1 = vmul.f32 %v271_v63, %v271_v63 }
 0x20a   :  { %274 = vadd.xlane.f32.xlu0 %v270_v62  ;;  %v278_v0 = vmul.f32 %v270_v62, %v270_v62 }
 0x20c   :  { %280 = vadd.xlane.f32.xlu1 %v278_v0 }
 0x20e   :  { %276 = vadd.xlane.f32.xlu0 %v271_v63 }
 0x210   :  { %282 = vadd.xlane.f32.xlu1 %v279_v1 }
 0x297   :  { %v275_v2 = vpop.xlane.xlu0 %274 }
 0x298   :  { %v284_v3 = vmul.f32 0.03125, %v275_v2 }
 0x299   :  { %v281_v4 = vpop.xlane.xlu1 %280 }
 0x29a   :  { %v288_v5 = vmul.f32 %v284_v3, %v284_v3  ;;  %v286_v6 = vmul.f32 0.03125, %v281_v4  ;;  %v294_v18 = vsub.f32 %v270_v62, %v284_v3 }
 0x29b   :  { %v277_v7 = vpop.xlane.xlu0 %276 }
 0x29c   :  { %v290_v8 = vsub.f32 %v286_v6, %v288_v5  ;;  %v285_v9 = vmul.f32 0.03125, %v277_v7 }
 0x29d   :  { %v283_v10 = vpop.xlane.xlu1 %282 }
 0x29e   :  { %v292_v11 = vmax.f32 %v290_v8, 0.0  ;;  %v289_v12 = vmul.f32 %v285_v9, %v285_v9  ;;  %v287_v13 = vmul.f32 0.03125, %v283_v10  ;;  %v295_v23 = vsub.f32 %v271_v63, %v285_v9 }
 0x2a0   :  { %v296_v14 = vadd.f32 1e-05, %v292_v11  ;;  %v291_v15 = vsub.f32 %v287_v13, %v289_v12 }
 0x2a2   :  { %518 = vrsqrt.f32 %v296_v14  ;;  %v293_v16 = vmax.f32 %v291_v15, 0.0 }
 0x2a4   :  { %v297_v17 = vadd.f32 1e-05, %v293_v16 }
 0x2a6   :  { %520 = vrsqrt.f32 %v297_v17 }
 0x2ac   :  { %v519_v19 = vpop.eup %518 }
 0x2ad   :  { %v300_v21 = vmul.f32 %v519_v19, %v294_v18 }
 0x2af   :  { %v308_v24 = vmul.f32 %v340_v20, %v300_v21 }
 0x2b0   :  { %v521_v25 = vpop.eup %520 }
 0x2b1   :  { %v301_v26 = vmul.f32 %v521_v25, %v295_v23  ;;  %v316_v27 = vadd.f32 %v341_v22, %v308_v24 }
 0x2b3   :  { %v309_v28 = vmul.f32 %v340_v20, %v301_v26  ;;  %318 = vst [vmem:[#allocation8] sm:$0xff] %v316_v27 }
 0x2b5   :  { %v317_v29 = vadd.f32 %v341_v22, %v309_v28 }
 0x2b7   :  { %319 = vst [vmem:[#allocation8 + $0x8] sm:$0xff] %v317_v29 }
 0x2b8   :  { %599 = shalt.err (!%p596_p0)
}
 0x2b9   :  { %s600_s24 = scalar_lea.hbm %s752_s7, 256 }
 0x2ba   :  { %p601_p1 = scmp.ne.s32.totalorder %s752_s7, %s600_s24  ;;  %p604_p2 = scmp.lt.u32.totalorder %s600_s24, %s752_s7 }
 0x2bc   :  { %p606_p3 = pnand %p604_p2, %p601_p1 }
 0x2be   :  { %609 = shalt.err (!%p606_p3)
}
 0x2bf   :  { %331 = dma.vmem_to_hbm [thread:$0]  %s326_s22, 256, %s752_s7, [#allocation4], %s618_s13, %s618_s13, %s619_s14  }
 0x2c0   :  { %614 = dma.done.wait [#allocation4], 256  }
 0x2c1   :  { %615 = vsyncadd [#allocation4], 4294967040 }
 0x2c2   :  { %335 = vsyncpa [#allocation3], 1 }
 0x2c3   :  { %336 = vsyncpa [#allocation6], 1 }
 0x2c4   :  { %337 = vsyncpa [#allocation4], 1 }

</bundles_post_ra>
